<compile_context>
chip_gen: v7x
topology: tpu7x:2x2x1
jax: 0.10.0
libtpu: 0.0.40
codegen_flags: <defaults>
</compile_context>

<pallas_src>
import jax
import jax.numpy as jnp
from jax.experimental import pallas as pl
from jax.experimental.pallas import tpu as pltpu


def _interp_matrix(in_size: int, out_size: int) -> jnp.ndarray:
    """Row-interpolation matrix matching PyTorch bilinear, align_corners=False."""
    scale = in_size / out_size
    dst = jnp.arange(out_size, dtype=jnp.float32)
    src = jnp.maximum((dst + 0.5) * scale - 0.5, 0.0)   # PyTorch clamps src >= 0
    i0 = jnp.minimum(jnp.floor(src).astype(jnp.int32), in_size - 1)
    i1 = jnp.minimum(i0 + 1, in_size - 1)
    lam = jnp.clip(src - i0.astype(jnp.float32), 0.0, 1.0)
    rows = jnp.arange(out_size)
    W = jnp.zeros((out_size, in_size), jnp.float32)
    W = W.at[rows, i0].add(1.0 - lam)
    W = W.at[rows, i1].add(lam)
    return W


def _upsample_kernel(x_ref, wh_ref, bd_ref, o_ref):
    # x_ref:  (H, TB*W)       TB planes of one group, folded into the lane axis
    # wh_ref: (Ho, H)         row-interpolation matrix (resident)
    # bd_ref: (TB*W, TB*Wo)   block-diagonal of Ww^T (resident, pre-transposed)
    # o_ref:  (Ho, TB*Wo)     lane-dense output slab
    x = x_ref[...].astype(jnp.float32)
    t = jnp.dot(wh_ref[...], x, preferred_element_type=jnp.float32)      # (Ho, TB*W)
    out = jnp.dot(t, bd_ref[...], preferred_element_type=jnp.float32)    # (Ho, TB*Wo)
    o_ref[...] = out.astype(o_ref.dtype)


def _choose_group_size(nc: int, w: int, upsampling: int) -> int:
    """Planes folded per grid step."""
    # Lane density first: fold enough planes that the folded width is >= 128.
    tb = min(nc, max(1, pl.cdiv(128, w)))

    # Amortize per-step overhead further, but keep:
    #  (a) >= 2 balanced grid steps when enough planes exist (v7x has 2 TCs),
    #  (b) the block-diagonal column weight modest so it stays VMEM-resident
    #      alongside double-buffered tiles even on v7x's 64 MiB VMEM.
    def bd_bytes(t):
        return (t * w) * (t * w * upsampling) * 4

    while nc >= 4 * tb and bd_bytes(2 * tb) <= (2 << 20):
        tb *= 2
    return tb


def bilinear_upsample(x: jnp.ndarray, upsampling: int = 2) -> jnp.ndarray:
    # layout: NCHW (same as PyTorch).  Planes are grouped; each grid step
    # upsamples TB planes as one lane-dense (H, TB*W) -> (Ho, TB*Wo) slab.
    N, C, H, W = x.shape
    Ho, Wo = H * upsampling, W * upsampling
    NC = N * C

    TB = _choose_group_size(NC, W, upsampling)
    G = pl.cdiv(NC, TB)
    NCp = G * TB

    wh = _interp_matrix(H, Ho)                                  # (Ho, H)
    ww = _interp_matrix(W, Wo)                                  # (Wo, W)
    # Pre-transposed, block-diagonal column weight: no ww.T inside the kernel.
    bd = jnp.kron(jnp.eye(TB, dtype=jnp.float32), ww.T)         # (TB*W, TB*Wo)

    x_flat = x.reshape(NC, H, W)
    if NCp != NC:
        x_flat = jnp.pad(x_flat, ((0, NCp - NC), (0, 0), (0, 0)))
    # Fold the plane batch into the lane (last) axis: (G, H, TB*W).
    x_fold = x_flat.reshape(G, TB, H, W).transpose(0, 2, 1, 3).reshape(G, H, TB * W)

    flops = int(2 * NC * Ho * W * (H + Wo))
    bytes_accessed = int(4 * NC * (H * W + Ho * Wo)
                         + 4 * (Ho * H + (TB * W) * (TB * Wo)))

    out_fold = pl.pallas_call(
        _upsample_kernel,
        out_shape=jax.ShapeDtypeStruct((G, Ho, TB * Wo), x.dtype),
        grid=(G,),
        in_specs=[
            pl.BlockSpec((None, H, TB * W), lambda g: (g, 0, 0)),    # TB planes / step
            pl.BlockSpec((Ho, H), lambda g: (0, 0)),                 # Wh, resident
            pl.BlockSpec((TB * W, TB * Wo), lambda g: (0, 0)),       # blkdiag(Ww^T), resident
        ],
        out_specs=pl.BlockSpec((None, Ho, TB * Wo), lambda g: (g, 0, 0)),
        compiler_params=pltpu.CompilerParams(
            dimension_semantics=("parallel",)),
        cost_estimate=pl.CostEstimate(
            flops=flops, transcendentals=0, bytes_accessed=bytes_accessed),
    )(x_fold, wh, bd)

    # Unfold back to (N, C, Ho, Wo).
    out = (out_fold.reshape(G, Ho, TB, Wo)
           .transpose(0, 2, 1, 3)
           .reshape(NCp, Ho, Wo)[:NC]
           .reshape(N, C, Ho, Wo))
    return out


def _reference(x: jnp.ndarray, upsampling: int = 2) -> jnp.ndarray:
    """Pure-JAX reference (same separable-matrix semantics as PyTorch)."""
    N, C, H, W = x.shape
    wh = _interp_matrix(H, H * upsampling)
    ww = _interp_matrix(W, W * upsampling)
    return jnp.einsum('oh,nchw,pw->ncop', wh, x.astype(jnp.float32), ww).astype(x.dtype)


if __name__ == "__main__":
    key = jax.random.PRNGKey(0)
    N, C, H, W = 2, 4, 16, 16
    x = jax.random.normal(key, (N, C, H, W), dtype=jnp.float32)

    out = bilinear_upsample(x, upsampling=2)
    out = jax.block_until_ready(out)

    ref = _reference(x, upsampling=2)
    assert out.shape == (N, C, 2 * H, 2 * W), out.shape
    assert jnp.allclose(out, ref, atol=1e-5, rtol=1e-5), "mismatch vs reference"

    print("KERNEL_OK")
</pallas_src>

<mosaic_0001>
module attributes {stable_mosaic.version = 11 : i64} {
  func.func @_upsample_kernel(%arg0: i32, %arg1: memref<1x16x128xf32, #tpu.memory_space<vmem>>, %arg2: memref<32x16xf32, #tpu.memory_space<vmem>>, %arg3: memref<128x256xf32, #tpu.memory_space<vmem>>, %arg4: memref<1x32x256xf32, #tpu.memory_space<vmem>>) attributes {dimension_semantics = [#tpu.dimension_semantics<parallel>], iteration_bounds = array<i64: 1>, scalar_prefetch = 0 : i64, scratch_operands = 0 : i64, tpu.core_type = #tpu.core_type<tc>, window_params = [{transform_indices = @transform_0, window_bounds = array<i64: 1, 16, 128>}, {pipeline_mode = #tpu.pipeline_mode<synchronous>, transform_indices = @transform_1, window_bounds = array<i64: 32, 16>}, {pipeline_mode = #tpu.pipeline_mode<synchronous>, transform_indices = @transform_2, window_bounds = array<i64: 128, 256>}, {transform_indices = @transform_3, window_bounds = array<i64: 1, 32, 256>}]} {
    %c0 = arith.constant 0 : index
    %c0_0 = arith.constant 0 : index
    %c0_1 = arith.constant 0 : index
    %0 = vector.load %arg1[%c0, %c0_0, %c0_1] : memref<1x16x128xf32, #tpu.memory_space<vmem>>, vector<1x16x128xf32>
    %1 = vector.shape_cast %0 : vector<1x16x128xf32> to vector<16x128xf32>
    %c0_2 = arith.constant 0 : index
    %c0_3 = arith.constant 0 : index
    %2 = vector.load %arg2[%c0_2, %c0_3] : memref<32x16xf32, #tpu.memory_space<vmem>>, vector<32x16xf32>
    %cst = arith.constant dense<0.000000e+00> : vector<32x128xf32>
    %3 = tpu.matmul %2, %1, %cst {dimension_numbers = #tpu.dot_dimension_numbers<[1], [0], [0], [1], [0, 0, 1, 1], [], []>} : vector<32x16xf32>, vector<16x128xf32>, vector<32x128xf32> -> vector<32x128xf32>
    %c0_4 = arith.constant 0 : index
    %c0_5 = arith.constant 0 : index
    %4 = vector.load %arg3[%c0_4, %c0_5] : memref<128x256xf32, #tpu.memory_space<vmem>>, vector<128x256xf32>
    %cst_6 = arith.constant dense<0.000000e+00> : vector<32x256xf32>
    %5 = tpu.matmul %3, %4, %cst_6 {dimension_numbers = #tpu.dot_dimension_numbers<[1], [0], [0], [1], [0, 0, 1, 1], [], []>} : vector<32x128xf32>, vector<128x256xf32>, vector<32x256xf32> -> vector<32x256xf32>
    %c0_7 = arith.constant 0 : index
    %c0_8 = arith.constant 0 : index
    %c0_9 = arith.constant 0 : index
    %6 = vector.load %arg4[%c0_7, %c0_8, %c0_9] : memref<1x32x256xf32, #tpu.memory_space<vmem>>, vector<1x32x256xf32>
    %7 = vector.shape_cast %6 : vector<1x32x256xf32> to vector<32x256xf32>
    %8 = vector.shape_cast %5 : vector<32x256xf32> to vector<1x32x256xf32>
    tpu.vector_store %arg4[%c0_7, %c0_8, %c0_9], %8 {strides = array<i32>} : memref<1x32x256xf32, #tpu.memory_space<vmem>>, vector<1x32x256xf32>,
    return
  }
  func.func @transform_0(%arg0: i32) -> (i32, i32, i32) {
    %c0_i32 = arith.constant 0 : i32
    %c0_i32_0 = arith.constant 0 : i32
    %c0_i32_1 = arith.constant 0 : i32
    return %arg0, %c0_i32, %c0_i32_0 : i32, i32, i32
  }
  func.func @transform_1(%arg0: i32) -> (i32, i32) {
    %c0_i32 = arith.constant 0 : i32
    %c0_i32_0 = arith.constant 0 : i32
    %c0_i32_1 = arith.constant 0 : i32
    return %c0_i32, %c0_i32_0 : i32, i32
  }
  func.func @transform_2(%arg0: i32) -> (i32, i32) {
    %c0_i32 = arith.constant 0 : i32
    %c0_i32_0 = arith.constant 0 : i32
    %c0_i32_1 = arith.constant 0 : i32
    return %c0_i32, %c0_i32_0 : i32, i32
  }
  func.func @transform_3(%arg0: i32) -> (i32, i32, i32) {
    %c0_i32 = arith.constant 0 : i32
    %c0_i32_0 = arith.constant 0 : i32
    %c0_i32_1 = arith.constant 0 : i32
    return %arg0, %c0_i32, %c0_i32_0 : i32, i32, i32
  }
}

</mosaic_0001>

<bundles_post_ra>
// kernel: tpu_custom_call.1
= control target key start
LH: loop header
LB: loop body
LE: loop exit
PB: predicated region body
PF: predicated region fallthrough
CT: control target
= control target key end

     0   :  { %8 = vsyncpa [#allocation3], 0  ;;  %s481_s0 = inlined_call_operand.vmem [shape: f32[1,16,128], index: 0, kind: input, shape index: {}]   ;;  %s482_s1 = inlined_call_operand.vmem [shape: f32[32,16], index: 1, kind: input, shape index: {}]   ;;  %s483_s2 = inlined_call_operand.hbm [shape: f32[128,256], index: 2, kind: input, shape index: {}]   ;;  %s484_s3 = inlined_call_operand.hbm [shape: f32[1,32,256], index: 3, kind: output, shape index: {}]  }
   0x1   :  { %9 = vsyncpa [#allocation4], 0  ;;  %s404_s12 = smov [#allocation2]   ;;  %s356_s16 = scalar_lea.hbm %s483_s2, 4096 }
   0x2   :  { %s19_s13 = sshll.u32 %s404_s12, 4  ;;  %p357_p0 = scmp.ne.s32.totalorder %s483_s2, %s356_s16  ;;  %s20_s13 = int_to_ptr.vmem [resolvable:$true] %s19_s13 }
   0x3   :  { %p360_p1 = scmp.lt.u32.totalorder %s356_s16, %s483_s2 }
   0x5   :  { %p362_p2 = pnand %p360_p1, %p357_p0 }
   0x7   :  { %365 = shalt.err (!%p362_p2)
}
   0x8   :  { %s366_s21 = scalar_lea.vmem %s20_s13, 4096  ;;  %p371_p4 = scmp.lt.s32.totalorder %s20_s13, %s20_s13 }
   0x9   :  { %p367_p3 = scmp.ne.s32.totalorder %s20_s13, %s366_s21  ;;  %p372_p5 = scmp.lt.s32.totalorder %s366_s21, %s366_s21 }
   0xb   :  { %p373_p6 = por %p372_p5, %p371_p4 }
   0xd   :  { %p374_p7 = pnand %p373_p6, %p367_p3 }
   0xf   :  { %377 = shalt.err (!%p374_p7)
}
  0x10   :  { %s405_s22 = smov 256   ;;  %s406_s23 = smov 16  }
  0x11   :  { %25 = dma.hbm_to_vmem [thread:$0]  %s483_s2, 4096, %s20_s13, [#allocation3], %s405_s22, %s405_s22, %s406_s23  }
  0x12   :  { %400 = dma.done.wait [#allocation3], 4096  }
  0x13   :  { %401 = vsyncadd [#allocation3], 4294963200  ;;  %vm35_vm0 = vcmask 130048   ;;  %v29_v0 = vld [vmem:[%s481_s0] sm:$0xff]  ;;  %v30_v1 = vld [vmem:[%s481_s0 + $0x8] sm:$0xff]  ;;  %v407_v55 = vmov 0.0  }
  0x14   :  { %v31_v2 = vld [vmem:[%s482_s1] sm:$0xff]  ;;  %v299_v3 = vpack.c.bf16 %v30_v1, %v29_v0  ;;  %v32_v4 = vld [vmem:[%s482_s1 + $0x8] sm:$0xff]  ;;  %v136_v6 = vld [vmem:[#allocation2 + $0x18] sm:$0xff]  ;;  %235 = vmatprep.mubr.f32.mxu1 %v407_v55 }
  0x15   :  { %293 = vmatprep.mubr.msk.f32.mxu0 %vm35_vm0, %v31_v2  ;;  %v134_v5 = vld [vmem:[#allocation2 + $0x8] sm:$0xff]  ;;  %v133_v7 = vld [vmem:[#allocation2] sm:$0xff]  ;;  %v135_v9 = vld [vmem:[#allocation2 + $0x10] sm:$0xff] }
  0x16   :  { %300 = vmatprep.subr.bf16.mxu0 %v299_v3  ;;  %v303_v8 = vpack.c.bf16 %v136_v6, %v134_v5  ;;  %v138_v10 = vld [vmem:[#allocation2 + $0x28] sm:$0xff]  ;;  %v140_v11 = vld [vmem:[#allocation2 + $0x38] sm:$0xff]  ;;  %v305_v12 = vpack.c.bf16 %v135_v9, %v133_v7  ;;  %v137_v14 = vld [vmem:[#allocation2 + $0x20] sm:$0xff] }
  0x17   :  { %302 = vmatpush3.bf16.msra.mxu0 %v299_v3  ;;  %v307_v13 = vpack.c.bf16 %v140_v11, %v138_v10  ;;  %v139_v15 = vld [vmem:[#allocation2 + $0x30] sm:$0xff]  ;;  %v142_v16 = vld [vmem:[#allocation2 + $0x48] sm:$0xff]  ;;  %v144_v18 = vld [vmem:[#allocation2 + $0x58] sm:$0xff] }
  0x18   :  { %v33_v17 = vld [vmem:[%s482_s1 + $0x10] sm:$0xff]  ;;  %335 = vmatprep.subr.bf16.mxu1 %v303_v8  ;;  %304 = vmatprep.subr.bf16.mxu0 %v303_v8  ;;  %v309_v19 = vpack.c.bf16 %v139_v15, %v137_v14  ;;  %v311_v20 = vpack.c.bf16 %v144_v18, %v142_v16  ;;  %v141_v21 = vld [vmem:[#allocation2 + $0x40] sm:$0xff]  ;;  %v34_v23 = vld [vmem:[%s482_s1 + $0x18] sm:$0xff]  ;;  %s408_s1 = smov [#allocation5]  }
  0x19   :  { %343 = vmatpush1.bf16.msra.mxu1 %v305_v12  ;;  %v143_v22 = vld [vmem:[#allocation2 + $0x50] sm:$0xff]  ;;  %v146_v24 = vld [vmem:[#allocation2 + $0x68] sm:$0xff]  ;;  %v148_v25 = vld [vmem:[#allocation2 + $0x78] sm:$0xff]  ;;  %s267_s9 = sshll.u32 %s408_s1, 4  ;;  %s268_s9 = int_to_ptr.vmem [resolvable:$true] %s267_s9 }
  0x1a   :  { %294 = vmatmul.mubr.msk.f32.vlgmr.msra.gmra.mrb[0].mxu0 %vm35_vm0, %v32_v4  ;;  %336 = vmatprep.subr.bf16.mxu1 %v307_v13  ;;  %v313_v26 = vpack.c.bf16 %v143_v22, %v141_v21  ;;  %v315_v27 = vpack.c.bf16 %v148_v25, %v146_v24  ;;  %v145_v28 = vld [vmem:[#allocation2 + $0x60] sm:$0xff]  ;;  %v147_v29 = vld [vmem:[#allocation2 + $0x70] sm:$0xff]  ;;  %v150_v30 = vld [vmem:[#allocation2 + $0x88] sm:$0xff]  ;;  %s378_s10 = scalar_lea.vmem %s268_s9, 1024  ;;  %p383_p9 = scmp.lt.s32.totalorder %s268_s9, %s268_s9 }
  0x1b   :  { %296 = vmatprep.mubr.msk.f32.mxu0 %vm35_vm0, %v33_v17  ;;  %306 = vmatpush1.bf16.msra.mxu0 %v305_v12  ;;  %v152_v31 = vld [vmem:[#allocation2 + $0x98] sm:$0xff]  ;;  %v317_v32 = vpack.c.bf16 %v147_v29, %v145_v28  ;;  %v149_v34 = vld [vmem:[#allocation2 + $0x80] sm:$0xff]  ;;  %v151_v35 = vld [vmem:[#allocation2 + $0x90] sm:$0xff]  ;;  %p379_p8 = scmp.ne.s32.totalorder %s268_s9, %s378_s10  ;;  %p384_p10 = scmp.lt.s32.totalorder %s378_s10, %s378_s10 }
  0x1c   :  { %308 = vmatprep.subr.bf16.mxu0 %v307_v13  ;;  %v319_v33 = vpack.c.bf16 %v152_v31, %v150_v30  ;;  %v154_v36 = vld [vmem:[#allocation2 + $0xa8] sm:$0xff]  ;;  %v156_v37 = vld [vmem:[#allocation2 + $0xb8] sm:$0xff]  ;;  %v321_v38 = vpack.c.bf16 %v151_v35, %v149_v34  ;;  %v153_v40 = vld [vmem:[#allocation2 + $0xa0] sm:$0xff] }
  0x1d   :  { %344 = vmatpush1.bf16.msra.mxu1 %v309_v19  ;;  %v323_v39 = vpack.c.bf16 %v156_v37, %v154_v36  ;;  %v155_v41 = vld [vmem:[#allocation2 + $0xb0] sm:$0xff]  ;;  %v158_v42 = vld [vmem:[#allocation2 + $0xc8] sm:$0xff]  ;;  %v160_v43 = vld [vmem:[#allocation2 + $0xd8] sm:$0xff]  ;;  %p385_p11 = por %p384_p10, %p383_p9 }
  0x1e   :  { %297 = vmatmul.mubr.msk.f32.gmra.mrb[2].mxu0 %vm35_vm0, %v34_v23  ;;  %337 = vmatprep.subr.bf16.mxu1 %v311_v20  ;;  %v325_v44 = vpack.c.bf16 %v155_v41, %v153_v40  ;;  %v327_v45 = vpack.c.bf16 %v160_v43, %v158_v42  ;;  %v157_v46 = vld [vmem:[#allocation2 + $0xc0] sm:$0xff]  ;;  %v159_v47 = vld [vmem:[#allocation2 + $0xd0] sm:$0xff]  ;;  %v162_v48 = vld [vmem:[#allocation2 + $0xe8] sm:$0xff] }
  0x1f   :  { %310 = vmatpush1.bf16.msra.mxu0 %v309_v19  ;;  %v164_v49 = vld [vmem:[#allocation2 + $0xf8] sm:$0xff]  ;;  %v329_v50 = vpack.c.bf16 %v159_v47, %v157_v46  ;;  %v161_v52 = vld [vmem:[#allocation2 + $0xe0] sm:$0xff]  ;;  %v163_v53 = vld [vmem:[#allocation2 + $0xf0] sm:$0xff]  ;;  %229 = vmatprep.mubr.f32.mxu0 %v407_v55  ;;  %p386_p12 = pnand %p385_p11, %p379_p8 }
  0x20   :  { %312 = vmatprep.subr.bf16.mxu0 %v311_v20  ;;  %v331_v51 = vpack.c.bf16 %v164_v49, %v162_v48  ;;  %v333_v54 = vpack.c.bf16 %v163_v53, %v161_v52 }
  0x21   :  { %345 = vmatpush1.bf16.msra.mxu1 %v313_v26 }
  0x22   :  { %338 = vmatprep.subr.bf16.mxu1 %v315_v27 }
  0x23   :  { %314 = vmatpush1.bf16.msra.mxu0 %v313_v26 }
  0x24   :  { %316 = vmatprep.subr.bf16.mxu0 %v315_v27 }
  0x25   :  { %346 = vmatpush1.bf16.msra.mxu1 %v317_v32 }
  0x26   :  { %339 = vmatprep.subr.bf16.mxu1 %v319_v33 }
  0x27   :  { %318 = vmatpush1.bf16.msra.mxu0 %v317_v32 }
  0x28   :  { %320 = vmatprep.subr.bf16.mxu0 %v319_v33 }
  0x29   :  { %347 = vmatpush1.bf16.msra.mxu1 %v321_v38 }
  0x2a   :  { %340 = vmatprep.subr.bf16.mxu1 %v323_v39 }
  0x2b   :  { %322 = vmatpush1.bf16.msra.mxu0 %v321_v38 }
  0x2c   :  { %324 = vmatprep.subr.bf16.mxu0 %v323_v39 }
  0x2d   :  { %348 = vmatpush1.bf16.msra.mxu1 %v325_v44 }
  0x2e   :  { %341 = vmatprep.subr.bf16.mxu1 %v327_v45 }
  0x2f   :  { %326 = vmatpush1.bf16.msra.mxu0 %v325_v44 }
  0x30   :  { %328 = vmatprep.subr.bf16.mxu0 %v327_v45 }
  0x31   :  { %349 = vmatpush1.bf16.msra.mxu1 %v329_v50 }
  0x32   :  { %342 = vmatprep.subr.bf16.mxu1 %v331_v51 }
  0x33   :  { %330 = vmatpush1.bf16.msra.mxu0 %v329_v50 }
  0x34   :  { %332 = vmatprep.subr.bf16.mxu0 %v331_v51 }
  0x35   :  { %350 = vmatpush1.bf16.msra.mxu1 %v333_v54 }
  0x37   :  { %334 = vmatpush1.bf16.msra.mxu0 %v333_v54 }
  0xed   :  { %v295_v56 = vpop.f32.mrb[0].mxu0 }
  0xee   :  { %v114_v57 = vpop.f32.mrb[1].mxu0  ;;  %236 = vmatmul.mubr.f32.vlgmr.msra.gmra.mrb[0].mxu1 %v295_v56 }
  0xef   :  { %230 = vmatmul.mubr.f32.vlgmr.msra.gmra.mrb[4].mxu0 %v114_v57  ;;  %241 = vmatprep.mubr.f32.mxu1 %v407_v55 }
  0xf1   :  { %v298_v58 = vpop.f32.mrb[2].mxu0 }
  0xf2   :  { %v124_v59 = vpop.f32.mrb[3].mxu0 }
  0xf3   :  { %242 = vmatmul.mubr.f32.gmra.mrb[2].mxu1 %v124_v59 }
  0xf4   :  { %247 = vmatprep.mubr.f32.mxu1 %v407_v55 }
  0xf7   :  { %248 = vmatmul.mubr.f32.gmra.mrb[4].mxu1 %v298_v58 }
 0x1c1   :  { %v237_v60 = vpop.f32.mrb[0].mxu1 }
 0x1c2   :  { %256 = vst [vmem:[#allocation5 + $0x10] sm:$0xff] %v237_v60  ;;  %v231_v61 = vpop.f32.mrb[4].mxu0  ;;  %v239_v62 = vpop.f32.mrb[1].mxu1 }
 0x1c3   :  { %254 = vst [vmem:[#allocation5] sm:$0xff] %v231_v61  ;;  %257 = vst [vmem:[#allocation5 + $0x18] sm:$0xff] %v239_v62  ;;  %v233_v63 = vpop.f32.mrb[5].mxu0 }
 0x1c4   :  { %255 = vst [vmem:[#allocation5 + $0x8] sm:$0xff] %v233_v63 }
 0x1c6   :  { %v243_v0 = vpop.f32.mrb[2].mxu1 }
 0x1c7   :  { %258 = vst [vmem:[#allocation5 + $0x20] sm:$0xff] %v243_v0  ;;  %v245_v1 = vpop.f32.mrb[3].mxu1 }
 0x1c8   :  { %259 = vst [vmem:[#allocation5 + $0x28] sm:$0xff] %v245_v1 }
 0x1ca   :  { %v249_v2 = vpop.f32.mrb[4].mxu1 }
 0x1cb   :  { %260 = vst [vmem:[#allocation5 + $0x30] sm:$0xff] %v249_v2  ;;  %v251_v3 = vpop.f32.mrb[5].mxu1 }
 0x1cc   :  { %261 = vst [vmem:[#allocation5 + $0x38] sm:$0xff] %v251_v3 }
 0x1cd   :  { %389 = shalt.err (!%p386_p12)
}
 0x1ce   :  { %s390_s13 = scalar_lea.hbm %s484_s3, 1024 }
 0x1cf   :  { %p391_p13 = scmp.ne.s32.totalorder %s484_s3, %s390_s13  ;;  %p394_p0 = scmp.lt.u32.totalorder %s390_s13, %s484_s3 }
 0x1d1   :  { %p396_p1 = pnand %p394_p0, %p391_p13 }
 0x1d3   :  { %399 = shalt.err (!%p396_p1)
}
 0x1d4   :  { %273 = dma.vmem_to_hbm [thread:$0]  %s268_s9, 1024, %s484_s3, [#allocation4], %s405_s22, %s405_s22, %s406_s23  }
 0x1d5   :  { %402 = dma.done.wait [#allocation4], 1024  }
 0x1d6   :  { %403 = vsyncadd [#allocation4], 4294966272 }
 0x1d7   :  { %277 = vsyncpa [#allocation3], 1 }
 0x1d8   :  { %278 = vsyncpa [#allocation4], 1 }

</bundles_post_ra>
